<compile_context>
chip_gen: v7x
topology: tpu7x:2x2x1
jax: 0.10.0
libtpu: 0.0.40
codegen_flags: <defaults>
</compile_context>

<pallas_src>
import functools

import jax
import jax.numpy as jnp
import numpy as np
from jax.experimental import pallas as pl
from jax.experimental.pallas import tpu as pltpu


def _loss_sums_kernel(out_ref, lab_ref, res_ref, acc_ref):
    """Processes one (5, TB, 128) channels-first tile of anchors.

    out_ref / lab_ref : (5, TB, 128) f32 VMEM (row 0 = objectness, 1:5 = z,h,w,d)
    res_ref           : (1, 10, 128) f32 VMEM per-core lane-partial sums, rows:
                        [n_pos, n_neg, bce_pos, bce_neg, pos_correct,
                         neg_correct, sl_z, sl_h, sl_w, sl_d]
    acc_ref           : (10, TB, 128) f32 VMEM scratch accumulator; updated with
                        pure elementwise adds each step, reduced once at the end.
    """
    step = pl.program_id(1)

    @pl.when(step == 0)
    def _init():
        acc_ref[...] = jnp.zeros_like(acc_ref)

    o0 = out_ref[0]                       # (TB, 128) objectness logit
    l0 = lab_ref[0]                       # (TB, 128) label: 1 pos / -1 neg / 0 ignore+pad

    pos = (l0 > 0.5).astype(jnp.float32)
    neg = (l0 < -0.5).astype(jnp.float32)

    # Stable log-sigmoid via softplus: 1 exp + 1 log on the EUP (vs the
    # sigmoid path's exp + divide + 2x log).  -100 clamp matches nn.BCELoss.
    sp = jnp.maximum(-o0, 0.0) + jnp.log(1.0 + jnp.exp(-jnp.abs(o0)))
    log_p = jnp.maximum(-sp, -100.0)          # log(sigmoid(o0))
    log_1mp = jnp.maximum(-o0 - sp, -100.0)   # log(1 - sigmoid(o0))

    bce_pos = -(l0 * log_p + (1.0 - l0) * log_1mp)   # target = label itself (>0.5)
    tn = l0 + 1.0                                    # -1 -> 0 for negatives
    bce_neg = -(tn * log_p + (1.0 - tn) * log_1mp)

    acc_ref[0] += pos
    acc_ref[1] += neg
    acc_ref[2] += pos * bce_pos
    acc_ref[3] += neg * bce_neg
    acc_ref[4] += jnp.where(o0 >= 0.0, pos, 0.0)     # prob >= 0.5  <=>  logit >= 0
    acc_ref[5] += jnp.where(o0 < 0.0, neg, 0.0)      # prob <  0.5  <=>  logit <  0

    # SmoothL1 (beta = 1.0, PyTorch default) on all 4 regression channels at
    # once, restricted to positive anchors.
    d = out_ref[1:5] - lab_ref[1:5]                  # (4, TB, 128)
    ad = jnp.abs(d)
    sl = jnp.where(ad < 1.0, 0.5 * d * d, ad - 0.5)
    acc_ref[6:10] += pos * sl

    @pl.when(step == pl.num_programs(1) - 1)
    def _finalize():
        res_ref[0] = jnp.sum(acc_ref[...], axis=1)   # (10, 128) lane-partial sums


@functools.partial(jax.jit, static_argnames=("block_rows",))
def loss_forward(output, labels, *, block_rows=512):
    """Equivalent of Loss(num_hard=0).forward(output, labels, train=True).

    Returns: (loss, classify_loss, r_z, r_h, r_w, r_d,
              pos_correct, pos_total, neg_correct, neg_total)
    """
    out2 = output.reshape(-1, 5).astype(jnp.float32)
    lab2 = labels.reshape(-1, 5).astype(jnp.float32)
    n = out2.shape[0]

    # Channels-first dense layout: (5, NB, 128).  Rows-per-block is a multiple
    # of 8 (sublane tiling); total rows padded so the 2-way core split is even.
    nb = -(-n // 128)                                    # 128-lane rows needed
    tb = min(block_rows, max(8, ((nb + 7) // 8) * 8))    # rows per grid block
    nb_pad = -(-nb // (2 * tb)) * (2 * tb)
    npad = nb_pad * 128
    pad = npad - n

    # Padded label[0] == 0 so pad lanes are neither positive nor negative and
    # padded outputs (0) produce finite, masked-out BCE/SmoothL1 values.
    # TODO(synk): the (N,5)->(5,N) transpose + zero pad is one fused XLA copy;
    # it disappears entirely if the detector head emits channels-first.
    out_t = jnp.pad(out2, ((0, pad), (0, 0))).T.reshape(5, nb_pad, 128)
    lab_t = jnp.pad(lab2, ((0, pad), (0, 0))).T.reshape(5, nb_pad, 128)

    l_inner = nb_pad // (2 * tb)
    grid = (2, l_inner)

    def in_map(c, i):
        return (0, c * l_inner + i, 0)

    partial = pl.pallas_call(
        _loss_sums_kernel,
        out_shape=jax.ShapeDtypeStruct((2, 10, 128), jnp.float32),
        grid_spec=pltpu.PrefetchScalarGridSpec(
            num_scalar_prefetch=0,
            grid=grid,
            in_specs=[
                pl.BlockSpec((5, tb, 128), in_map),
                pl.BlockSpec((5, tb, 128), in_map),
            ],
            out_specs=pl.BlockSpec((1, 10, 128), lambda c, i: (c, 0, 0)),
            scratch_shapes=[pltpu.VMEM((10, tb, 128), jnp.float32)],
        ),
        compiler_params=pltpu.CompilerParams(
            dimension_semantics=("parallel", "arbitrary"),
            vmem_limit_bytes=32 * 1024 * 1024,
        ),
    )(out_t, lab_t)

    res = jnp.sum(partial, axis=(0, 2))                  # (10,) final combine

    n_pos = res[0]
    n_neg = res[1]
    bce_pos_sum = res[2]
    bce_neg_sum = res[3]
    pos_correct = res[4]
    neg_correct = res[5]
    sl_sums = res[6:10]

    has_pos = n_pos > 0.0
    safe_pos = jnp.maximum(n_pos, 1.0)
    safe_neg = jnp.maximum(n_neg, 1.0)

    bce_pos_mean = bce_pos_sum / safe_pos
    bce_neg_mean = bce_neg_sum / safe_neg
    classify_loss = jnp.where(
        has_pos, 0.5 * bce_pos_mean + 0.5 * bce_neg_mean, 0.5 * bce_neg_mean
    )
    regress = jnp.where(has_pos, sl_sums / safe_pos, jnp.zeros((4,), jnp.float32))
    loss = classify_loss + jnp.sum(regress)

    return (
        loss,
        classify_loss,
        regress[0],
        regress[1],
        regress[2],
        regress[3],
        jnp.where(has_pos, pos_correct, 0.0).astype(jnp.int32),
        n_pos.astype(jnp.int32),
        neg_correct.astype(jnp.int32),
        n_neg.astype(jnp.int32),
    )


def _reference_numpy(output, labels):
    out = np.asarray(output, np.float32).reshape(-1, 5)
    lab = np.asarray(labels, np.float32).reshape(-1, 5)
    pos = lab[:, 0] > 0.5
    neg = lab[:, 0] < -0.5
    prob = 1.0 / (1.0 + np.exp(-out[:, 0]))
    logp = np.maximum(np.log(prob), -100.0)
    log1mp = np.maximum(np.log(1.0 - prob), -100.0)

    def bce(p_log, p1m_log, t):
        return -(t * p_log + (1.0 - t) * p1m_log)

    bce_neg = bce(logp[neg], log1mp[neg], lab[neg, 0] + 1.0).mean() if neg.any() else 0.0
    regress = []
    if pos.any():
        bce_pos = bce(logp[pos], log1mp[pos], lab[pos, 0]).mean()
        classify = 0.5 * bce_pos + 0.5 * bce_neg
        for k in range(1, 5):
            d = out[pos, k] - lab[pos, k]
            ad = np.abs(d)
            sl = np.where(ad < 1.0, 0.5 * d * d, ad - 0.5)
            regress.append(sl.mean())
        pos_correct = int((prob[pos] >= 0.5).sum())
        pos_total = int(pos.sum())
    else:
        classify = 0.5 * bce_neg
        regress = [0.0, 0.0, 0.0, 0.0]
        pos_correct, pos_total = 0, 0
    loss = classify + sum(regress)
    neg_correct = int((prob[neg] < 0.5).sum())
    neg_total = int(neg.sum())
    return [loss, classify] + regress + [pos_correct, pos_total, neg_correct, neg_total]


if __name__ == "__main__":
    key = jax.random.PRNGKey(0)
    k1, k2, k3 = jax.random.split(key, 3)

    batch, anchors = 2, 8  # -> 16 rows of 5
    output = jax.random.normal(k1, (batch, anchors, 5), dtype=jnp.float32)

    # Labels: channel 0 in {1 (pos), -1 (neg), 0 (ignore)}, channels 1-4 random.
    cls = jax.random.randint(k2, (batch, anchors), 0, 3)  # 0/1/2
    obj = jnp.where(cls == 0, 1.0, jnp.where(cls == 1, -1.0, 0.0)).astype(jnp.float32)
    reg = jax.random.normal(k3, (batch, anchors, 4), dtype=jnp.float32)
    labels = jnp.concatenate([obj[..., None], reg], axis=-1)

    results = loss_forward(output, labels)
    results = jax.block_until_ready(results)

    ref = _reference_numpy(np.asarray(output), np.asarray(labels))
    got = [float(results[i]) for i in range(6)] + [int(results[i]) for i in range(6, 10)]
    np.testing.assert_allclose(got[:6], ref[:6], rtol=1e-5, atol=1e-5)
    assert got[6:] == ref[6:], (got[6:], ref[6:])

    print("KERNEL_OK")
</pallas_src>

<mosaic_0001>
module attributes {stable_mosaic.version = 11 : i64} {
  func.func @_loss_sums_kernel(%arg0: i32, %arg1: i32, %arg2: memref<5x8x128xf32, #tpu.memory_space<vmem>>, %arg3: memref<5x8x128xf32, #tpu.memory_space<vmem>>, %arg4: memref<1x10x128xf32, #tpu.memory_space<vmem>>, %arg5: memref<10x8x128xf32, #tpu.memory_space<vmem>>) attributes {dimension_semantics = [#tpu.dimension_semantics<parallel>, #tpu.dimension_semantics<arbitrary>], iteration_bounds = array<i64: 2, 1>, scalar_prefetch = 0 : i64, scratch_operands = 1 : i64, tpu.core_type = #tpu.core_type<tc>, window_params = [{transform_indices = @transform_0, window_bounds = array<i64: 5, 8, 128>}, {transform_indices = @transform_1, window_bounds = array<i64: 5, 8, 128>}, {transform_indices = @transform_2, window_bounds = array<i64: 1, 10, 128>}]} {
    %c0_i32 = arith.constant 0 : i32
    %0 = arith.cmpi eq, %arg1, %c0_i32 : i32
    %1 = arith.extui %0 : i1 to i32
    %c0_i32_0 = arith.constant 0 : i32
    %2 = arith.cmpi ne, %1, %c0_i32_0 : i32
    scf.if %2 {
      %cst_71 = arith.constant 0.000000e+00 : f32
      %119 = vector.broadcast %cst_71 : f32 to vector<10x8x128xf32>
      %c0_72 = arith.constant 0 : index
      %c0_73 = arith.constant 0 : index
      %c0_74 = arith.constant 0 : index
      %120 = vector.load %arg5[%c0_72, %c0_73, %c0_74] : memref<10x8x128xf32, #tpu.memory_space<vmem>>, vector<10x8x128xf32>
      tpu.vector_store %arg5[%c0_72, %c0_73, %c0_74], %119 {strides = array<i32>} : memref<10x8x128xf32, #tpu.memory_space<vmem>>, vector<10x8x128xf32>,
    } else {
    }
    %c0 = arith.constant 0 : index
    %c0_1 = arith.constant 0 : index
    %c0_2 = arith.constant 0 : index
    %3 = vector.load %arg2[%c0, %c0_1, %c0_2] : memref<5x8x128xf32, #tpu.memory_space<vmem>>, vector<1x8x128xf32>
    %4 = vector.shape_cast %3 : vector<1x8x128xf32> to vector<8x128xf32>
    %c0_3 = arith.constant 0 : index
    %c0_4 = arith.constant 0 : index
    %c0_5 = arith.constant 0 : index
    %5 = vector.load %arg3[%c0_3, %c0_4, %c0_5] : memref<5x8x128xf32, #tpu.memory_space<vmem>>, vector<1x8x128xf32>
    %6 = vector.shape_cast %5 : vector<1x8x128xf32> to vector<8x128xf32>
    %cst = arith.constant 5.000000e-01 : f32
    %7 = vector.broadcast %cst : f32 to vector<8x128xf32>
    %8 = arith.cmpf ogt, %6, %7 : vector<8x128xf32>
    %9 = arith.extui %8 : vector<8x128xi1> to vector<8x128xi32>
    %10 = arith.sitofp %9 : vector<8x128xi32> to vector<8x128xf32>
    %cst_6 = arith.constant -5.000000e-01 : f32
    %11 = vector.broadcast %cst_6 : f32 to vector<8x128xf32>
    %12 = arith.cmpf olt, %6, %11 : vector<8x128xf32>
    %13 = arith.extui %12 : vector<8x128xi1> to vector<8x128xi32>
    %14 = arith.sitofp %13 : vector<8x128xi32> to vector<8x128xf32>
    %cst_7 = arith.constant 0.000000e+00 : f32
    %15 = vector.broadcast %cst_7 : f32 to vector<8x128xf32>
    %16 = arith.subf %15, %4 : vector<8x128xf32>
    %cst_8 = arith.constant 0.000000e+00 : f32
    %17 = vector.broadcast %cst_8 : f32 to vector<8x128xf32>
    %18 = arith.maximumf %16, %17 : vector<8x128xf32>
    %19 = math.absf %4 : vector<8x128xf32>
    %cst_9 = arith.constant 0.000000e+00 : f32
    %20 = vector.broadcast %cst_9 : f32 to vector<8x128xf32>
    %21 = arith.subf %20, %19 : vector<8x128xf32>
    %22 = math.exp %21 : vector<8x128xf32>
    %cst_10 = arith.constant 1.000000e+00 : f32
    %23 = vector.broadcast %cst_10 : f32 to vector<8x128xf32>
    %24 = arith.addf %23, %22 : vector<8x128xf32>
    %25 = math.log %24 : vector<8x128xf32>
    %26 = arith.addf %18, %25 : vector<8x128xf32>
    %cst_11 = arith.constant 0.000000e+00 : f32
    %27 = vector.broadcast %cst_11 : f32 to vector<8x128xf32>
    %28 = arith.subf %27, %26 : vector<8x128xf32>
    %cst_12 = arith.constant -1.000000e+02 : f32
    %29 = vector.broadcast %cst_12 : f32 to vector<8x128xf32>
    %30 = arith.maximumf %28, %29 : vector<8x128xf32>
    %cst_13 = arith.constant 0.000000e+00 : f32
    %31 = vector.broadcast %cst_13 : f32 to vector<8x128xf32>
    %32 = arith.subf %31, %4 : vector<8x128xf32>
    %33 = arith.subf %32, %26 : vector<8x128xf32>
    %cst_14 = arith.constant -1.000000e+02 : f32
    %34 = vector.broadcast %cst_14 : f32 to vector<8x128xf32>
    %35 = arith.maximumf %33, %34 : vector<8x128xf32>
    %36 = arith.mulf %6, %30 : vector<8x128xf32>
    %cst_15 = arith.constant 1.000000e+00 : f32
    %37 = vector.broadcast %cst_15 : f32 to vector<8x128xf32>
    %38 = arith.subf %37, %6 : vector<8x128xf32>
    %39 = arith.mulf %38, %35 : vector<8x128xf32>
    %40 = arith.addf %36, %39 : vector<8x128xf32>
    %cst_16 = arith.constant 0.000000e+00 : f32
    %41 = vector.broadcast %cst_16 : f32 to vector<8x128xf32>
    %42 = arith.subf %41, %40 : vector<8x128xf32>
    %cst_17 = arith.constant 1.000000e+00 : f32
    %43 = vector.broadcast %cst_17 : f32 to vector<8x128xf32>
    %44 = arith.addf %6, %43 : vector<8x128xf32>
    %45 = arith.mulf %44, %30 : vector<8x128xf32>
    %cst_18 = arith.constant 1.000000e+00 : f32
    %46 = vector.broadcast %cst_18 : f32 to vector<8x128xf32>
    %47 = arith.subf %46, %44 : vector<8x128xf32>
    %48 = arith.mulf %47, %35 : vector<8x128xf32>
    %49 = arith.addf %45, %48 : vector<8x128xf32>
    %cst_19 = arith.constant 0.000000e+00 : f32
    %50 = vector.broadcast %cst_19 : f32 to vector<8x128xf32>
    %51 = arith.subf %50, %49 : vector<8x128xf32>
    %c0_20 = arith.constant 0 : index
    %c0_21 = arith.constant 0 : index
    %c0_22 = arith.constant 0 : index
    %52 = vector.load %arg5[%c0_20, %c0_21, %c0_22] : memref<10x8x128xf32, #tpu.memory_space<vmem>>, vector<1x8x128xf32>
    %53 = vector.shape_cast %52 : vector<1x8x128xf32> to vector<8x128xf32>
    %54 = arith.addf %53, %10 : vector<8x128xf32>
    %c0_23 = arith.constant 0 : index
    %c0_24 = arith.constant 0 : index
    %c0_25 = arith.constant 0 : index
    %55 = vector.load %arg5[%c0_23, %c0_24, %c0_25] : memref<10x8x128xf32, #tpu.memory_space<vmem>>, vector<1x8x128xf32>
    %56 = vector.shape_cast %55 : vector<1x8x128xf32> to vector<8x128xf32>
    %57 = vector.shape_cast %54 : vector<8x128xf32> to vector<1x8x128xf32>
    tpu.vector_store %arg5[%c0_23, %c0_24, %c0_25], %57 {strides = array<i32>} : memref<10x8x128xf32, #tpu.memory_space<vmem>>, vector<1x8x128xf32>,
    %c1 = arith.constant 1 : index
    %c0_26 = arith.constant 0 : index
    %c0_27 = arith.constant 0 : index
    %58 = vector.load %arg5[%c1, %c0_26, %c0_27] : memref<10x8x128xf32, #tpu.memory_space<vmem>>, vector<1x8x128xf32>
    %59 = vector.shape_cast %58 : vector<1x8x128xf32> to vector<8x128xf32>
    %60 = arith.addf %59, %14 : vector<8x128xf32>
    %c1_28 = arith.constant 1 : index
    %c0_29 = arith.constant 0 : index
    %c0_30 = arith.constant 0 : index
    %61 = vector.load %arg5[%c1_28, %c0_29, %c0_30] : memref<10x8x128xf32, #tpu.memory_space<vmem>>, vector<1x8x128xf32>
    %62 = vector.shape_cast %61 : vector<1x8x128xf32> to vector<8x128xf32>
    %63 = vector.shape_cast %60 : vector<8x128xf32> to vector<1x8x128xf32>
    tpu.vector_store %arg5[%c1_28, %c0_29, %c0_30], %63 {strides = array<i32>} : memref<10x8x128xf32, #tpu.memory_space<vmem>>, vector<1x8x128xf32>,
    %c2 = arith.constant 2 : index
    %c0_31 = arith.constant 0 : index
    %c0_32 = arith.constant 0 : index
    %64 = vector.load %arg5[%c2, %c0_31, %c0_32] : memref<10x8x128xf32, #tpu.memory_space<vmem>>, vector<1x8x128xf32>
    %65 = vector.shape_cast %64 : vector<1x8x128xf32> to vector<8x128xf32>
    %66 = arith.mulf %10, %42 : vector<8x128xf32>
    %67 = arith.addf %65, %66 : vector<8x128xf32>
    %c2_33 = arith.constant 2 : index
    %c0_34 = arith.constant 0 : index
    %c0_35 = arith.constant 0 : index
    %68 = vector.load %arg5[%c2_33, %c0_34, %c0_35] : memref<10x8x128xf32, #tpu.memory_space<vmem>>, vector<1x8x128xf32>
    %69 = vector.shape_cast %68 : vector<1x8x128xf32> to vector<8x128xf32>
    %70 = vector.shape_cast %67 : vector<8x128xf32> to vector<1x8x128xf32>
    tpu.vector_store %arg5[%c2_33, %c0_34, %c0_35], %70 {strides = array<i32>} : memref<10x8x128xf32, #tpu.memory_space<vmem>>, vector<1x8x128xf32>,
    %c3 = arith.constant 3 : index
    %c0_36 = arith.constant 0 : index
    %c0_37 = arith.constant 0 : index
    %71 = vector.load %arg5[%c3, %c0_36, %c0_37] : memref<10x8x128xf32, #tpu.memory_space<vmem>>, vector<1x8x128xf32>
    %72 = vector.shape_cast %71 : vector<1x8x128xf32> to vector<8x128xf32>
    %73 = arith.mulf %14, %51 : vector<8x128xf32>
    %74 = arith.addf %72, %73 : vector<8x128xf32>
    %c3_38 = arith.constant 3 : index
    %c0_39 = arith.constant 0 : index
    %c0_40 = arith.constant 0 : index
    %75 = vector.load %arg5[%c3_38, %c0_39, %c0_40] : memref<10x8x128xf32, #tpu.memory_space<vmem>>, vector<1x8x128xf32>
    %76 = vector.shape_cast %75 : vector<1x8x128xf32> to vector<8x128xf32>
    %77 = vector.shape_cast %74 : vector<8x128xf32> to vector<1x8x128xf32>
    tpu.vector_store %arg5[%c3_38, %c0_39, %c0_40], %77 {strides = array<i32>} : memref<10x8x128xf32, #tpu.memory_space<vmem>>, vector<1x8x128xf32>,
    %c4 = arith.constant 4 : index
    %c0_41 = arith.constant 0 : index
    %c0_42 = arith.constant 0 : index
    %78 = vector.load %arg5[%c4, %c0_41, %c0_42] : memref<10x8x128xf32, #tpu.memory_space<vmem>>, vector<1x8x128xf32>
    %79 = vector.shape_cast %78 : vector<1x8x128xf32> to vector<8x128xf32>
    %cst_43 = arith.constant 0.000000e+00 : f32
    %80 = vector.broadcast %cst_43 : f32 to vector<8x128xf32>
    %81 = arith.cmpf oge, %4, %80 : vector<8x128xf32>
    %cst_44 = arith.constant 0.000000e+00 : f32
    %82 = vector.broadcast %cst_44 : f32 to vector<8x128xf32>
    %83 = arith.select %81, %10, %82 : vector<8x128xi1>, vector<8x128xf32>
    %84 = arith.addf %79, %83 : vector<8x128xf32>
    %c4_45 = arith.constant 4 : index
    %c0_46 = arith.constant 0 : index
    %c0_47 = arith.constant 0 : index
    %85 = vector.load %arg5[%c4_45, %c0_46, %c0_47] : memref<10x8x128xf32, #tpu.memory_space<vmem>>, vector<1x8x128xf32>
    %86 = vector.shape_cast %85 : vector<1x8x128xf32> to vector<8x128xf32>
    %87 = vector.shape_cast %84 : vector<8x128xf32> to vector<1x8x128xf32>
    tpu.vector_store %arg5[%c4_45, %c0_46, %c0_47], %87 {strides = array<i32>} : memref<10x8x128xf32, #tpu.memory_space<vmem>>, vector<1x8x128xf32>,
    %c5 = arith.constant 5 : index
    %c0_48 = arith.constant 0 : index
    %c0_49 = arith.constant 0 : index
    %88 = vector.load %arg5[%c5, %c0_48, %c0_49] : memref<10x8x128xf32, #tpu.memory_space<vmem>>, vector<1x8x128xf32>
    %89 = vector.shape_cast %88 : vector<1x8x128xf32> to vector<8x128xf32>
    %cst_50 = arith.constant 0.000000e+00 : f32
    %90 = vector.broadcast %cst_50 : f32 to vector<8x128xf32>
    %91 = arith.cmpf olt, %4, %90 : vector<8x128xf32>
    %cst_51 = arith.constant 0.000000e+00 : f32
    %92 = vector.broadcast %cst_51 : f32 to vector<8x128xf32>
    %93 = arith.select %91, %14, %92 : vector<8x128xi1>, vector<8x128xf32>
    %94 = arith.addf %89, %93 : vector<8x128xf32>
    %c5_52 = arith.constant 5 : index
    %c0_53 = arith.constant 0 : index
    %c0_54 = arith.constant 0 : index
    %95 = vector.load %arg5[%c5_52, %c0_53, %c0_54] : memref<10x8x128xf32, #tpu.memory_space<vmem>>, vector<1x8x128xf32>
    %96 = vector.shape_cast %95 : vector<1x8x128xf32> to vector<8x128xf32>
    %97 = vector.shape_cast %94 : vector<8x128xf32> to vector<1x8x128xf32>
    tpu.vector_store %arg5[%c5_52, %c0_53, %c0_54], %97 {strides = array<i32>} : memref<10x8x128xf32, #tpu.memory_space<vmem>>, vector<1x8x128xf32>,
    %c1_55 = arith.constant 1 : index
    %c0_56 = arith.constant 0 : index
    %c0_57 = arith.constant 0 : index
    %98 = vector.load %arg2[%c1_55, %c0_56, %c0_57] : memref<5x8x128xf32, #tpu.memory_space<vmem>>, vector<4x8x128xf32>
    %c1_58 = arith.constant 1 : index
    %c0_59 = arith.constant 0 : index
    %c0_60 = arith.constant 0 : index
    %99 = vector.load %arg3[%c1_58, %c0_59, %c0_60] : memref<5x8x128xf32, #tpu.memory_space<vmem>>, vector<4x8x128xf32>
    %100 = arith.subf %98, %99 : vector<4x8x128xf32>
    %101 = math.absf %100 : vector<4x8x128xf32>
    %cst_61 = arith.constant 1.000000e+00 : f32
    %102 = vector.broadcast %cst_61 : f32 to vector<4x8x128xf32>
    %103 = arith.cmpf olt, %101, %102 : vector<4x8x128xf32>
    %cst_62 = arith.constant 5.000000e-01 : f32
    %104 = vector.broadcast %cst_62 : f32 to vector<4x8x128xf32>
    %105 = arith.mulf %104, %100 : vector<4x8x128xf32>
    %106 = arith.mulf %105, %100 : vector<4x8x128xf32>
    %cst_63 = arith.constant 5.000000e-01 : f32
    %107 = vector.broadcast %cst_63 : f32 to vector<4x8x128xf32>
    %108 = arith.subf %101, %107 : vector<4x8x128xf32>
    %109 = arith.select %103, %106, %108 : vector<4x8x128xi1>, vector<4x8x128xf32>
    %c6 = arith.constant 6 : index
    %c0_64 = arith.constant 0 : index
    %c0_65 = arith.constant 0 : index
    %110 = vector.load %arg5[%c6, %c0_64, %c0_65] : memref<10x8x128xf32, #tpu.memory_space<vmem>>, vector<4x8x128xf32>
    %111 = vector.shape_cast %10 : vector<8x128xf32> to vector<1x8x128xf32>
    %112 = vector.broadcast %111 : vector<1x8x128xf32> to vector<4x8x128xf32>
    %113 = arith.mulf %112, %109 : vector<4x8x128xf32>
    %114 = arith.addf %110, %113 : vector<4x8x128xf32>
    %c6_66 = arith.constant 6 : index
    %c0_67 = arith.constant 0 : index
    %c0_68 = arith.constant 0 : index
    %115 = vector.load %arg5[%c6_66, %c0_67, %c0_68] : memref<10x8x128xf32, #tpu.memory_space<vmem>>, vector<4x8x128xf32>
    tpu.vector_store %arg5[%c6_66, %c0_67, %c0_68], %114 {strides = array<i32>} : memref<10x8x128xf32, #tpu.memory_space<vmem>>, vector<4x8x128xf32>,
    %c0_i32_69 = arith.constant 0 : i32
    %116 = arith.cmpi eq, %arg1, %c0_i32_69 : i32
    %117 = arith.extui %116 : i1 to i32
    %c0_i32_70 = arith.constant 0 : i32
    %118 = arith.cmpi ne, %117, %c0_i32_70 : i32
    scf.if %118 {
      %c0_71 = arith.constant 0 : index
      %c0_72 = arith.constant 0 : index
      %c0_73 = arith.constant 0 : index
      %119 = vector.load %arg5[%c0_71, %c0_72, %c0_73] : memref<10x8x128xf32, #tpu.memory_space<vmem>>, vector<10x8x128xf32>
      %cst_74 = arith.constant dense<0.000000e+00> : vector<10x128xf32>
      %120 = vector.multi_reduction <add>, %119, %cst_74 [1] : vector<10x8x128xf32> to vector<10x128xf32>
      %c0_75 = arith.constant 0 : index
      %c0_76 = arith.constant 0 : index
      %c0_77 = arith.constant 0 : index
      %121 = vector.load %arg4[%c0_75, %c0_76, %c0_77] : memref<1x10x128xf32, #tpu.memory_space<vmem>>, vector<1x10x128xf32>
      %122 = vector.shape_cast %121 : vector<1x10x128xf32> to vector<10x128xf32>
      %123 = vector.shape_cast %120 : vector<10x128xf32> to vector<1x10x128xf32>
      tpu.vector_store %arg4[%c0_75, %c0_76, %c0_77], %123 {strides = array<i32>} : memref<1x10x128xf32, #tpu.memory_space<vmem>>, vector<1x10x128xf32>,
    } else {
    }
    return
  }
  func.func @transform_0(%arg0: i32, %arg1: i32) -> (i32, i32, i32) {
    %c1_i32 = arith.constant 1 : i32
    %0 = arith.muli %arg0, %c1_i32 : i32
    %1 = arith.addi %0, %arg1 : i32
    %c0_i32 = arith.constant 0 : i32
    %c0_i32_0 = arith.constant 0 : i32
    %c0_i32_1 = arith.constant 0 : i32
    return %c0_i32, %1, %c0_i32_0 : i32, i32, i32
  }
  func.func @transform_1(%arg0: i32, %arg1: i32) -> (i32, i32, i32) {
    %c1_i32 = arith.constant 1 : i32
    %0 = arith.muli %arg0, %c1_i32 : i32
    %1 = arith.addi %0, %arg1 : i32
    %c0_i32 = arith.constant 0 : i32
    %c0_i32_0 = arith.constant 0 : i32
    %c0_i32_1 = arith.constant 0 : i32
    return %c0_i32, %1, %c0_i32_0 : i32, i32, i32
  }
  func.func @transform_2(%arg0: i32, %arg1: i32) -> (i32, i32, i32) {
    %c0_i32 = arith.constant 0 : i32
    %c0_i32_0 = arith.constant 0 : i32
    %c0_i32_1 = arith.constant 0 : i32
    return %arg0, %c0_i32, %c0_i32_0 : i32, i32, i32
  }
}

</mosaic_0001>

<bundles_post_ra>
// kernel: loss_forward.1
= control target key start
LH: loop header
LB: loop body
LE: loop exit
PB: predicated region body
PF: predicated region fallthrough
CT: control target
= control target key end

     0   :  { %s736_s9 = smov 0   ;;  %s738_s10 = smov 0   ;;  %s870_s0 = inlined_call_operand.vmem [shape: f32[5,16,128], index: 0, kind: input, shape index: {}]   ;;  %s871_s1 = inlined_call_operand.vmem [shape: f32[5,16,128], index: 1, kind: input, shape index: {}]   ;;  %s872_s2 = inlined_call_operand.vmem [shape: f32[2,10,128], index: 2, kind: output, shape index: {}]  }
   0x1   :  { %s740_s11 = smov 0   ;;  %s742_s12 = smov 0  }
   0x2   :  { %s744_s13 = smov 0  }
   0x3 LB: > { %s24_s14 = sadd.s32 1, %s714_s12  ;;  %p40_p1 = scmp.ne.s32.totalorder %s706_s10, %s702_s9  ;;  %s718_s13 = sphi %s744_s13, %s12_s13   ;;  %s714_s12 = sphi %s742_s12, %s881_s12   ;;  %s710_s11 = sphi %s740_s11, %s880_s11   ;;  %s706_s10 = sphi %s738_s10, %s879_s10   ;;  %s702_s9 = sphi %s736_s9, %s878_s9  }
   0x4   : > { %p26_p0 = scmp.ge.s32.totalorder %s24_s14, 2  ;;  %p41_p2 = scmp.eq.s32.totalorder %s718_s13, 0 }
   0x5   : > { %s33_s17 = sadd.s32 1, %s706_s10  ;;  %p609_p5 = scmp.ge.s32.totalorder %s718_s13, 2 }
   0x6   : > { %s883_s14 = smov (%p26_p0, %s24_s14), 0  ;;  %p767_p3 = por %p41_p2, %p40_p1 }
   0x7   : > { %s30_s16 = ssub.s32 %s714_s12, %s883_s14  ;;  %120 = sbr.rel (%p609_p5) target bundleno = 28 (0x1c), region = 16 }
   0x8   : > { %p31_p4 = scmp.eq.s32.totalorder %s30_s16, 0 }
   0xa   : > { %s775_s18 = scalar_select %p31_p4, %s706_s10, %s33_s17  }
   0xe   : > { %123 = sbr.rel (!%p767_p3) target bundleno = 21 (0x15), region = 20  ;;  %s125_s19 = sand.u32 (%p767_p3), 1, %s706_s10  }
   0xf   : > { %s610_s20 = sshll.u32 (%p767_p3), %s714_s12, 3  ;;  %s632_s21 = smul.u32 (%p767_p3), 40, %s125_s19 }
  0x10   : > { %s130_s24 = scalar_lea.vmem (%p767_p3), %s870_s0, %s610_s20 }
  0x11   : > { %v166_v0 = vld [vmem:[%s130_s24] sm:$0xff] (%p767_p3)  ;;  %v168_v1 = vld [vmem:[%s130_s24 + $0x10] sm:$0xff] (%p767_p3)  ;;  %s127_s25 = scalar_lea.vmem (%p767_p3), [#allocation3], %s632_s21 }
  0x12   : > { %v170_v2 = vld [vmem:[%s130_s24 + $0x20] sm:$0xff] (%p767_p3)  ;;  %v172_v3 = vld [vmem:[%s130_s24 + $0x30] sm:$0xff] (%p767_p3)  ;;  %167 = vst [vmem:[%s127_s25] sm:$0xff] (%p767_p3), %v166_v0  ;;  %169 = vst [vmem:[%s127_s25 + $0x8] sm:$0xff] (%p767_p3), %v168_v1 }
  0x13   : > { %v174_v4 = vld [vmem:[%s130_s24 + $0x40] sm:$0xff] (%p767_p3)  ;;  %171 = vst [vmem:[%s127_s25 + $0x10] sm:$0xff] (%p767_p3), %v170_v2  ;;  %173 = vst [vmem:[%s127_s25 + $0x18] sm:$0xff] (%p767_p3), %v172_v3 }
  0x14   : > { %175 = vst [vmem:[%s127_s25 + $0x20] sm:$0xff] (%p767_p3), %v174_v4 }
  0x15 PF: > { %181 = sbr.rel (!%p767_p3) target bundleno = 28 (0x1c), region = 58  ;;  %s183_s26 = sand.u32 (%p767_p3), 1, %s706_s10  }
  0x16   : > { %s611_s27 = sshll.u32 (%p767_p3), %s714_s12, 3  ;;  %s633_s28 = smul.u32 (%p767_p3), 40, %s183_s26 }
  0x17   : > { %s188_s3 = scalar_lea.vmem (%p767_p3), %s871_s1, %s611_s27 }
  0x18   : > { %v224_v5 = vld [vmem:[%s188_s3] sm:$0xff] (%p767_p3)  ;;  %v226_v6 = vld [vmem:[%s188_s3 + $0x10] sm:$0xff] (%p767_p3)  ;;  %s185_s4 = scalar_lea.vmem (%p767_p3), [#allocation4], %s633_s28 }
  0x19   : > { %v228_v7 = vld [vmem:[%s188_s3 + $0x20] sm:$0xff] (%p767_p3)  ;;  %v230_v8 = vld [vmem:[%s188_s3 + $0x30] sm:$0xff] (%p767_p3)  ;;  %225 = vst [vmem:[%s185_s4] sm:$0xff] (%p767_p3), %v224_v5  ;;  %227 = vst [vmem:[%s185_s4 + $0x8] sm:$0xff] (%p767_p3), %v226_v6 }
  0x1a   : > { %v232_v9 = vld [vmem:[%s188_s3 + $0x40] sm:$0xff] (%p767_p3)  ;;  %229 = vst [vmem:[%s185_s4 + $0x10] sm:$0xff] (%p767_p3), %v228_v7  ;;  %231 = vst [vmem:[%s185_s4 + $0x18] sm:$0xff] (%p767_p3), %v230_v8 }
  0x1b   : > { %233 = vst [vmem:[%s185_s4 + $0x20] sm:$0xff] (%p767_p3), %v232_v9 }
  0x1c PF: > { %p612_p6 = scmp.ge.s32.totalorder %s718_s13, 1  ;;  %p238_p7 = scmp.lt.s32.totalorder %s718_s13, 3 }
  0x1e   : > { %p239_p8 = pnand %p612_p6, %p238_p7 }
  0x1f   : > { %s245_s5 = sand.u32 (!%p239_p8), 1, %s702_s9   ;;  %v720_v29 = vmov (!%p239_p8), 0.0   ;;  %p279_p9 = scmp.lt.s32.totalorder (!%p239_p8), %s710_s11, 1  ;;  %vm498_vm6 = vcmask (!%p239_p8), 1041409   ;;  %vm500_vm9 = vcmask (!%p239_p8), 1042434   ;;  %vm502_vm10 = vcmask (!%p239_p8), 1043459  }
  0x20   : > { %242 = sbr.rel (%p239_p8) target bundleno = 102 (0x66), region = 96  ;;  %vm504_vm11 = vcmask (!%p239_p8), 1044484   ;;  %vm506_vm12 = vcmask (!%p239_p8), 1045509   ;;  %vm508_vm13 = vcmask (!%p239_p8), 1046534   ;;  %vm510_vm14 = vcmask (!%p239_p8), 1047559  }
  0x21   : > { %s634_s6 = smul.u32 (!%p239_p8), 40, %s245_s5 }
  0x23   : > { %s795_s7 = scalar_lea.vmem (!%p239_p8), [#allocation3], %s634_s6  ;;  %s803_s8 = scalar_lea.vmem (!%p239_p8), [#allocation4], %s634_s6 }
  0x24   : > { %v798_v10 = vld [vmem:[%s795_s7] sm:$0xff] (!%p239_p8)  ;;  %v619_v12 = vld [vmem:[%s795_s7 + $0x18] sm:$0xff] (!%p239_p8)  ;;  %v623_v15 = vld [vmem:[%s803_s8 + $0x18] sm:$0xff] (!%p239_p8) }
  0x25   : > { %v308_v11 = vand.u32 (!%p239_p8), 2147483647, %v798_v10  ;;  %v620_v13 = vld [vmem:[%s795_s7 + $0x20] sm:$0xff] (!%p239_p8)  ;;  %v624_v16 = vld [vmem:[%s803_s8 + $0x20] sm:$0xff] (!%p239_p8)  ;;  %v372_v18 = vsub.f32 (!%p239_p8), %v619_v12, %v623_v15  ;;  %v617_v35 = vld [vmem:[%s795_s7 + $0x8] sm:$0xff] (!%p239_p8)  ;;  %v306_v53 = vsub.f32 (!%p239_p8), 0.0, %v798_v10 }
  0x26   : > { %v373_v19 = vsub.f32 (!%p239_p8), %v620_v13, %v624_v16  ;;  %v808_v22 = vld [vmem:[%s803_s8] sm:$0xff] (!%p239_p8)  ;;  %v621_v36 = vld [vmem:[%s803_s8 + $0x8] sm:$0xff] (!%p239_p8)  ;;  %v622_v41 = vld [vmem:[%s803_s8 + $0x10] sm:$0xff] (!%p239_p8)  ;;  %vm350_vm7 = vcmp.ge.f32.partialorder (!%p239_p8), %v798_v10, 0.0  ;;  %vm356_vm8 = vcmp.lt.f32.partialorder (!%p239_p8), %v798_v10, 0.0 }
  0x27   : > { %v309_v14 = vsub.f32 0.0, %v308_v11  ;;  %v376_v20 = vand.u32 2147483647, %v372_v18  ;;  %v384_v23 = vmul.f32 0.5, %v372_v18  ;;  %vm300_vm0 = vcmp.gt.f32.partialorder %v808_v22, 0.5  ;;  %v618_v40 = vld [vmem:[%s795_s7 + $0x10] sm:$0xff] }
  0x28   : > { %v377_v21 = vand.u32 2147483647, %v373_v19  ;;  %v385_v24 = vmul.f32 0.5, %v373_v19  ;;  %v811_v30 = vsel %vm300_vm0, 1.0, %v720_v29  ;;  %v370_v44 = vsub.f32 %v617_v35, %v621_v36  ;;  %s885_s11 = smov (!%p279_p9, %s710_s11), 1 }
  0x29   : > { %v310_v17 = vmul.f32 1.442695, %v309_v14  ;;  %vm380_vm1 = vcmp.lt.f32.partialorder %v376_v20, 1.0  ;;  %v388_v25 = vmul.f32 %v384_v23, %v372_v18  ;;  %v627_v27 = vadd.f32 -0.5, %v376_v20  ;;  %s631_s9 = sshll.u32 %s885_s11, 4 }
  0x2a   : > { %vm381_vm2 = vcmp.lt.f32.partialorder %v377_v21, 1.0  ;;  %v389_v26 = vmul.f32 %v385_v24, %v373_v19  ;;  %v628_v28 = vadd.f32 -0.5, %v377_v21  ;;  %v371_v46 = vsub.f32 %v618_v40, %v622_v41  ;;  %s830_s17 = scalar_lea.vmem %s872_s2, %s631_s9 }
  0x2b   : > { %676 = vpow2.f32 %v310_v17  ;;  %v396_v31 = vsel %vm380_vm1, %v388_v25, %v627_v27  ;;  %v374_v49 = vand.u32 2147483647, %v370_v44  ;;  %v382_v50 = vmul.f32 0.5, %v370_v44 }
  0x2c   : > { %v397_v32 = vsel %vm381_vm2, %v389_v26, %v628_v28  ;;  %v405_v33 = vmul.f32 %v811_v30, %v396_v31  ;;  %v375_v54 = vand.u32 2147483647, %v371_v46  ;;  %v383_v55 = vmul.f32 0.5, %v371_v46 }
  0x2d   : > { %v406_v34 = vmul.f32 %v811_v30, %v397_v32  ;;  %vm303_vm3 = vcmp.lt.f32.partialorder %v808_v22, -0.5  ;;  %v386_v57 = vmul.f32 %v382_v50, %v370_v44  ;;  %v625_v58 = vadd.f32 -0.5, %v374_v49 }
  0x2e   : > { %v476_v37 = vrot.slane %v405_v33, 4  ;;  %vm823_vm4 = vcmp.lt.f32.partialorder %v374_v49, 1.0  ;;  %v616_v62 = vsel %vm303_vm3, 1.0, %v720_v29  ;;  %v307_v63 = vmax.f32 %v306_v53, 0.0 }
  0x2f   : > { %v482_v43 = vrot.slane %v406_v34, 4  ;;  %v387_v0 = vmul.f32 %v383_v55, %v371_v46  ;;  %v626_v1 = vadd.f32 -0.5, %v375_v54  ;;  %vm832_vm5 = vcmp.lt.f32.partialorder %v375_v54, 1.0 }
  0x30   : > { %v477_v42 = vadd.f32 %v476_v37, %v405_v33  ;;  %v325_v6 = vadd.f32 1.0, %v808_v22  ;;  %v394_v7 = vsel %vm823_vm4, %v386_v57, %v625_v58  ;;  %v428_v8 = vrot.slane %v811_v30, 4 }
  0x31   : > { %v483_v48 = vadd.f32 %v482_v43, %v406_v34  ;;  %v434_v9 = vrot.slane %v616_v62, 4  ;;  %v395_v13 = vsel %vm832_vm5, %v387_v0, %v626_v1  ;;  %v321_v14 = vsub.f32 1.0, %v808_v22 }
  0x32   : > { %v478_v45 = vrot.slane %v477_v42, 2  ;;  %v351_v15 = vsel %vm350_vm7, %v811_v30, 0.0  ;;  %v403_v16 = vmul.f32 %v811_v30, %v394_v7  ;;  %v327_v19 = vsub.f32 1.0, %v325_v6 }
  0x33   : > { %v484_v52 = vrot.slane %v483_v48, 2  ;;  %v357_v10 = vsel %vm356_vm8, %v616_v62, 0.0  ;;  %v404_v20 = vmul.f32 %v811_v30, %v395_v13  ;;  %v429_v21 = vadd.f32 %v811_v30, %v428_v8 }
  0x34   : > { %v479_v47 = vadd.f32 %v478_v45, %v477_v42  ;;  %v435_v23 = vadd.f32 %v616_v62, %v434_v9  ;;  %v452_v26 = vrot.slane %v351_v15, 4  ;;  %v458_v27 = vrot.slane %v357_v10, 4 }
  0x35   : > { %v677_v38 = vpop.eup %676  ;;  %v485_v56 = vadd.f32 %v484_v52, %v483_v48  ;;  %v464_v28 = vrot.slane %v403_v16, 4  ;;  %v430_v34 = vrot.slane %v429_v21, 2  ;;  %v470_v36 = vrot.slane %v404_v20, 4 }
  0x36   : > { %v312_v39 = vadd.f32 1.0, %v677_v38  ;;  %v480_v51 = vrot.slane %v479_v47, 1  ;;  %v436_v35 = vrot.slane %v435_v23, 2  ;;  %v459_v40 = vadd.f32 %v458_v27, %v357_v10 }
  0x37   : > { %v486_v61 = vrot.slane %v485_v56, 1  ;;  %v465_v43 = vadd.f32 %v464_v28, %v403_v16  ;;  %v431_v44 = vadd.f32 %v430_v34, %v429_v21  ;;  %v471_v46 = vadd.f32 %v470_v36, %v404_v20 }
  0x38   : > { %678 = vlog2.f32 %v312_v39  ;;  %v481_v60 = vadd.f32 %v480_v51, %v479_v47  ;;  %v453_v39 = vadd.f32 %v452_v26, %v351_v15  ;;  %v437_v45 = vadd.f32 %v436_v35, %v435_v23 }
  0x39   : > { %v487_v4 = vadd.f32 %v486_v61, %v485_v56  ;;  %v460_v49 = vrot.slane %v459_v40, 2  ;;  %v466_v52 = vrot.slane %v465_v43, 2  ;;  %v472_v55 = vrot.slane %v471_v46, 2 }
  0x3a   : > { %v438_v54 = vrot.slane %v437_v45, 1 }
  0x3b   : > { %v512_v11 = vsel %vm498_vm6, %v487_v4, %v481_v60  ;;  %v461_v59 = vadd.f32 %v460_v49, %v459_v40 }
  0x3c   : > { %516 = vst [vmem:[%s830_s17 + $0x8] sm:$0x3] %v512_v11  ;;  %v439_v1 = vadd.f32 %v438_v54, %v437_v45 }
  0x3d   : > { %v462_v4 = vrot.slane %v461_v59, 1 }
  0x42   : > { %v679_v2 = vpop.eup %678 }
  0x43   : > { %v314_v5 = vmul.f32 0.6931472, %v679_v2  ;;  %v473_v2 = vadd.f32 %v472_v55, %v471_v46 }
  0x45   : > { %v315_v12 = vadd.f32 %v314_v5, %v307_v63  ;;  %v467_v63 = vadd.f32 %v466_v52, %v465_v43  ;;  %v474_v8 = vrot.slane %v473_v2, 1 }
  0x47   : > { %v316_v17 = vsub.f32 0.0, %v315_v12  ;;  %v318_v18 = vsub.f32 %v306_v53, %v315_v12  ;;  %v432_v53 = vrot.slane %v431_v44, 1  ;;  %v468_v7 = vrot.slane %v467_v63, 1 }
  0x49   : > { %v317_v24 = vmax.f32 %v316_v17, -100.0  ;;  %v319_v25 = vmax.f32 %v318_v18, -100.0  ;;  %v433_v0 = vadd.f32 %v432_v53, %v431_v44  ;;  %v469_v15 = vadd.f32 %v468_v7, %v467_v63 }
  0x4a   : > { %v475_v17 = vadd.f32 %v474_v8, %v473_v2 }
  0x4b   : > { %v320_v29 = vmul.f32 %v317_v24, %v808_v22  ;;  %v322_v31 = vmul.f32 %v321_v14, %v319_v25  ;;  %v326_v32 = vmul.f32 %v325_v6, %v317_v24  ;;  %v328_v33 = vmul.f32 %v327_v19, %v319_v25 }
  0x4c   : > { %v454_v22 = vrot.slane %v453_v39, 2  ;;  %v499_v9 = vsel %vm498_vm6, %v439_v1, %v433_v0  ;;  %v463_v14 = vadd.f32 %v462_v4, %v461_v59 }
  0x4d   : > { %v323_v37 = vadd.f32 %v322_v31, %v320_v29  ;;  %v329_v38 = vadd.f32 %v328_v33, %v326_v32 }
  0x4e   : > { %v455_v58 = vadd.f32 %v454_v22, %v453_v39 }
  0x4f   : > { %v324_v41 = vsub.f32 0.0, %v323_v37  ;;  %v330_v42 = vsub.f32 0.0, %v329_v38 }
  0x50   : > { %v456_v3 = vrot.slane %v455_v58, 1 }
  0x51   : > { %v340_v47 = vmul.f32 %v811_v30, %v324_v41  ;;  %v345_v48 = vmul.f32 %v616_v62, %v330_v42 }
  0x52   : > { %v457_v13 = vadd.f32 %v456_v3, %v455_v58 }
  0x53   : > { %v440_v50 = vrot.slane %v340_v47, 4  ;;  %v446_v51 = vrot.slane %v345_v48, 4 }
  0x55   : > { %v441_v56 = vadd.f32 %v440_v50, %v340_v47  ;;  %v447_v57 = vadd.f32 %v446_v51, %v345_v48 }
  0x57   : > { %v442_v60 = vrot.slane %v441_v56, 2  ;;  %v448_v61 = vrot.slane %v447_v57, 2 }
  0x59   : > { %v443_v30 = vadd.f32 %v442_v60, %v441_v56  ;;  %v449_v62 = vadd.f32 %v448_v61, %v447_v57 }
  0x5b   : > { %v444_v5 = vrot.slane %v443_v30, 1  ;;  %v450_v6 = vrot.slane %v449_v62, 1 }
  0x5d   : > { %v445_v11 = vadd.f32 %v444_v5, %v443_v30  ;;  %v451_v12 = vadd.f32 %v450_v6, %v449_v62 }
  0x5f   : > { %v501_v16 = vsel %vm500_vm9, %v445_v11, %v499_v9 }
  0x60   : > { %v503_v18 = vsel %vm502_vm10, %v451_v12, %v501_v16 }
  0x61   : > { %v505_v19 = vsel %vm504_vm11, %v457_v13, %v503_v18 }
  0x62   : > { %v507_v10 = vsel %vm506_vm12, %v463_v14, %v505_v19 }
  0x63   : > { %v509_v20 = vsel %vm508_vm13, %v469_v15, %v507_v10 }
  0x64   : > { %v511_v21 = vsel %vm510_vm14, %v475_v17, %v509_v20 }
  0x65   : > { %515 = vst [vmem:[%s830_s17] sm:$0xff] %v511_v21 }
  0x66 PF: > { %s12_s13 = sadd.s32 1, %s718_s13   ;;  %s878_s9 = smov %s706_s10 }
  0x67   : > { %p9_p10 = scmp.ge.s32.totalorder %s12_s13, 4   ;;  %s879_s10 = smov %s775_s18 }
  0x68   : > { %s880_s11 = smov %s714_s12  ;;  %s881_s12 = smov %s883_s14 }
  0x69   :  { %11 = sbr.rel (!%p9_p10) target bundleno = 3 (0x3), region = 163 }

</bundles_post_ra>
